<compile_context>
chip_gen: v6e
topology: v6e:2x2x1
jax: 0.10.0
libtpu: 0.0.40
codegen_flags: <defaults>
</compile_context>

<pallas_src>
import functools

import jax
import jax.numpy as jnp
from jax.experimental import pallas as pl
from jax.experimental.pallas import tpu as pltpu

BN_EPS = 1e-5
LANE = 128      # lane width: pad matmul output columns to a multiple of this
SUBLANE = 16    # bf16 sublane packing: pad contracting dim / M-tiles to a multiple of this
DEF_TM = 512    # target rows per M tile (review: 512-1024)


def _round_up(x, m):
    return ((x + m - 1) // m) * m


def _pad2(a, rows, cols):
    r, c = a.shape
    return jnp.pad(a, ((0, rows - r), (0, cols - c)))


# ----------------------------- Pallas kernels -------------------------------

def _mm_stats_kernel(m_valid, p_ref, w_ref, b_ref, y_ref, s_ref, q_ref):
    """Pass 1: y = P @ W + b (bf16 in, f32 accum); accumulate per-column sum and
    sum-of-squares over the real rows (row < m_valid) across the M grid axis."""
    i = pl.program_id(0)

    @pl.when(i == 0)
    def _():
        s_ref[...] = jnp.zeros_like(s_ref)
        q_ref[...] = jnp.zeros_like(q_ref)

    y = jnp.dot(p_ref[...], w_ref[...], preferred_element_type=jnp.float32)
    y = y + b_ref[...]
    y_ref[...] = y

    tm = y_ref.shape[0]
    row = i * tm + jax.lax.broadcasted_iota(jnp.int32, (tm, 1), 0)
    ym = jnp.where(row < m_valid, y, 0.0)
    s_ref[...] += jnp.sum(ym, axis=0, keepdims=True)
    q_ref[...] += jnp.sum(ym * ym, axis=0, keepdims=True)


def _scale_shift_relu_kernel(y_ref, sc_ref, sh_ref, o_ref):
    """Pass 2: folded BatchNorm (scale/shift) + ReLU."""
    o_ref[...] = jnp.maximum(y_ref[...] * sc_ref[...] + sh_ref[...], 0.0)


def _mm_bias_kernel(p_ref, w_ref, b_ref, o_ref):
    o_ref[...] = (
        jnp.dot(p_ref[...], w_ref[...], preferred_element_type=jnp.float32)
        + b_ref[...]
    )


# ----------------------------- pallas_call wrappers --------------------------

def _matmul_stats_call(patches, w_mat, bias, *, tm=DEF_TM):
    """patches (M, Kd) f32, w_mat (Kd, C) f32, bias (C,) f32.
    Returns y_pad (Mp, Cp) f32, per-column sum / sumsq (width C), and the M tile size."""
    M, Kd = patches.shape
    Cmat = w_mat.shape[1]
    Kp = _round_up(Kd, SUBLANE)
    Cp = _round_up(Cmat, LANE)
    TM = min(tm, _round_up(M, SUBLANE))
    Mp = _round_up(M, TM)

    p_pad = _pad2(patches, Mp, Kp).astype(jnp.bfloat16)
    w_pad = _pad2(w_mat, Kp, Cp).astype(jnp.bfloat16)
    b_pad = jnp.pad(bias.astype(jnp.float32), (0, Cp - Cmat)).reshape(1, Cp)

    y_pad, col_sum, col_sq = pl.pallas_call(
        functools.partial(_mm_stats_kernel, M),
        out_shape=(
            jax.ShapeDtypeStruct((Mp, Cp), jnp.float32),
            jax.ShapeDtypeStruct((1, Cp), jnp.float32),
            jax.ShapeDtypeStruct((1, Cp), jnp.float32),
        ),
        grid=(Mp // TM,),
        in_specs=[
            pl.BlockSpec((TM, Kp), lambda i: (i, 0)),
            pl.BlockSpec((Kp, Cp), lambda i: (0, 0)),   # resident weight
            pl.BlockSpec((1, Cp), lambda i: (0, 0)),    # resident bias
        ],
        out_specs=(
            pl.BlockSpec((TM, Cp), lambda i: (i, 0)),
            pl.BlockSpec((1, Cp), lambda i: (0, 0)),    # resident accumulator
            pl.BlockSpec((1, Cp), lambda i: (0, 0)),    # resident accumulator
        ),
        compiler_params=pltpu.CompilerParams(dimension_semantics=("arbitrary",)),
    )(p_pad, w_pad, b_pad)
    return y_pad, col_sum[0, :Cmat], col_sq[0, :Cmat], TM


def _conv_bn_relu(patches, w_mat, bias, gamma, beta, *, fold_parity=False, tm=DEF_TM):
    """Fused (patches @ W + b) -> training-mode BatchNorm1d -> ReLU (two tiled passes).

    If fold_parity, the matmul columns are laid out [even C | odd C] for a transposed
    conv (C = Cmat // 2) and BN statistics are pooled over both parities per channel."""
    M = patches.shape[0]
    Cmat = w_mat.shape[1]
    y_pad, col_sum, col_sq, TM = _matmul_stats_call(patches, w_mat, bias, tm=tm)
    Mp, Cp = y_pad.shape

    if fold_parity:
        C = Cmat // 2
        col_sum = col_sum[:C] + col_sum[C:]
        col_sq = col_sq[:C] + col_sq[C:]
        count = 2.0 * M
    else:
        count = float(M)
    mean = col_sum / count
    var = jnp.maximum(col_sq / count - mean * mean, 0.0)      # biased (training-mode) var
    scale = gamma * jax.lax.rsqrt(var + BN_EPS)
    shift = beta - mean * scale
    if fold_parity:
        scale = jnp.concatenate([scale, scale])
        shift = jnp.concatenate([shift, shift])
    scale_p = jnp.pad(scale, (0, Cp - Cmat)).reshape(1, Cp)
    shift_p = jnp.pad(shift, (0, Cp - Cmat)).reshape(1, Cp)

    out = pl.pallas_call(
        _scale_shift_relu_kernel,
        out_shape=jax.ShapeDtypeStruct((Mp, Cp), jnp.float32),
        grid=(Mp // TM,),
        in_specs=[
            pl.BlockSpec((TM, Cp), lambda i: (i, 0)),
            pl.BlockSpec((1, Cp), lambda i: (0, 0)),
            pl.BlockSpec((1, Cp), lambda i: (0, 0)),
        ],
        out_specs=pl.BlockSpec((TM, Cp), lambda i: (i, 0)),
        compiler_params=pltpu.CompilerParams(dimension_semantics=("parallel",)),
    )(y_pad, scale_p, shift_p)
    return out[:M, :Cmat]


def _conv_bias(patches, w_mat, bias, *, tm=DEF_TM):
    """Plain conv (matmul + bias), no BN / ReLU."""
    M, Kd = patches.shape
    Cmat = w_mat.shape[1]
    Kp = _round_up(Kd, SUBLANE)
    Cp = _round_up(Cmat, LANE)
    TM = min(tm, _round_up(M, SUBLANE))
    Mp = _round_up(M, TM)

    p_pad = _pad2(patches, Mp, Kp).astype(jnp.bfloat16)
    w_pad = _pad2(w_mat, Kp, Cp).astype(jnp.bfloat16)
    b_pad = jnp.pad(bias.astype(jnp.float32), (0, Cp - Cmat)).reshape(1, Cp)

    y = pl.pallas_call(
        _mm_bias_kernel,
        out_shape=jax.ShapeDtypeStruct((Mp, Cp), jnp.float32),
        grid=(Mp // TM,),
        in_specs=[
            pl.BlockSpec((TM, Kp), lambda i: (i, 0)),
            pl.BlockSpec((Kp, Cp), lambda i: (0, 0)),
            pl.BlockSpec((1, Cp), lambda i: (0, 0)),
        ],
        out_specs=pl.BlockSpec((TM, Cp), lambda i: (i, 0)),
        compiler_params=pltpu.CompilerParams(dimension_semantics=("parallel",)),
    )(p_pad, w_pad, b_pad)
    return y[:M, :Cmat]


# --------------------------- plain-JAX glue (im2col) -------------------------

def _im2col(x_nlc, kernel, stride, pad):
    """x_nlc (N, L, C) -> patches (N*L_out, K*C), tap-major / channel-minor."""
    N, L, C = x_nlc.shape
    xp = jnp.pad(x_nlc, ((0, 0), (pad, pad), (0, 0)))
    L_out = (L + 2 * pad - kernel) // stride + 1
    cols = [xp[:, k:k + stride * L_out:stride, :] for k in range(kernel)]
    patches = jnp.stack(cols, axis=2)                      # (N, L_out, K, C)
    return patches.reshape(N * L_out, kernel * C), L_out


def _conv_w_to_mat(w):
    """PyTorch Conv1d weight (C_out, C_in, K) -> matmul weight (K*C_in, C_out)."""
    C_out, C_in, K = w.shape
    return jnp.transpose(w, (2, 1, 0)).reshape(K * C_in, C_out)


def _convtranspose_patches_wmat(x_nlc, w_t, bias):
    """ConvTranspose1d(k=4, s=2, p=1) via sub-pixel (output parity) decomposition.

    y[2m]   = x[m-1]·W[..,3] + x[m]·W[..,1]
    y[2m+1] = x[m]  ·W[..,2] + x[m+1]·W[..,0]
    => one stride-1 K=3 conv (window {m-1, m, m+1}) producing [even C_out | odd C_out].
    w_t: PyTorch ConvTranspose1d weight (C_in, C_out, K=4)."""
    N, L, C_in = x_nlc.shape
    C_out = w_t.shape[1]
    patches, L_mid = _im2col(x_nlc, 3, 1, 1)               # (N*L, 3*C_in)
    z = jnp.zeros((C_in, C_out), jnp.float32)
    w_even = jnp.concatenate([w_t[:, :, 3], w_t[:, :, 1], z], axis=0)   # taps m-1, m, m+1
    w_odd = jnp.concatenate([z, w_t[:, :, 2], w_t[:, :, 0]], axis=0)
    w_mat = jnp.concatenate([w_even, w_odd], axis=1)       # (3*C_in, 2*C_out)
    bias2 = jnp.concatenate([bias, bias])
    return patches, w_mat, bias2, L_mid


# ------------------------------- forward pass --------------------------------

def unet_cnn_embedding(x_ncl, params):
    """Matches UNetCNNEmbedding.forward. x_ncl: (N, C_in, L) -> (N, embed_dim, L)."""
    N, _, L = x_ncl.shape
    x = jnp.transpose(x_ncl, (0, 2, 1)).astype(jnp.float32)   # NLC

    # encoder1: Conv1d(k=7, s=2, p=3) + BN + ReLU
    p, L1 = _im2col(x, 7, 2, 3)
    y = _conv_bn_relu(p, _conv_w_to_mat(params["enc1_w"]), params["enc1_b"],
                      params["bn1_g"], params["bn1_b"])
    enc1 = y.reshape(N, L1, -1)

    # encoder2: Conv1d(k=5, s=2, p=2) + BN + ReLU
    p, L2 = _im2col(enc1, 5, 2, 2)
    y = _conv_bn_relu(p, _conv_w_to_mat(params["enc2_w"]), params["enc2_b"],
                      params["bn2_g"], params["bn2_b"])
    enc2 = y.reshape(N, L2, -1)

    # decoder1: ConvTranspose1d(k=4, s=2, p=1) + BN + ReLU (sub-pixel decomposition)
    p, w_mat, b2, Lm = _convtranspose_patches_wmat(enc2, params["dec1_w"], params["dec1_b"])
    y = _conv_bn_relu(p, w_mat, b2, params["bn3_g"], params["bn3_b"], fold_parity=True)
    dec1 = y.reshape(N, Lm, 2, -1).reshape(N, 2 * Lm, -1)

    # skip connection + decoder2
    skip = dec1 + enc1
    p, w_mat, b2, Lm = _convtranspose_patches_wmat(skip, params["dec2_w"], params["dec2_b"])
    y = _conv_bn_relu(p, w_mat, b2, params["bn4_g"], params["bn4_b"], fold_parity=True)
    dec2 = y.reshape(N, Lm, 2, -1).reshape(N, 2 * Lm, -1)

    # final_conv: Conv1d(k=3, s=1, p=1), no BN / ReLU
    p, L5 = _im2col(dec2, 3, 1, 1)
    y = _conv_bias(p, _conv_w_to_mat(params["final_w"]), params["final_b"])
    out = y.reshape(N, L5, -1)

    return jnp.transpose(out, (0, 2, 1))   # back to NCL


# ----------------------------- pure-JAX reference ----------------------------

def _ref_forward(x_ncl, params):
    def conv(x, w, b, stride, pad):
        y = jax.lax.conv_general_dilated(x, w, (stride,), [(pad, pad)],
                                         dimension_numbers=("NCH", "OIH", "NCH"))
        return y + b[None, :, None]

    def convT(x, w, b, stride, pad):
        K = w.shape[-1]
        w_conv = jnp.flip(w, -1).transpose(1, 0, 2)          # (C_out, C_in, K)
        y = jax.lax.conv_general_dilated(x, w_conv, (1,),
                                         [(K - 1 - pad, K - 1 - pad)],
                                         lhs_dilation=(stride,),
                                         dimension_numbers=("NCH", "OIH", "NCH"))
        return y + b[None, :, None]

    def bn_relu(y, g, bvec):
        mean = y.mean(axis=(0, 2), keepdims=True)
        var = ((y - mean) ** 2).mean(axis=(0, 2), keepdims=True)
        yn = (y - mean) * jax.lax.rsqrt(var + BN_EPS)
        return jnp.maximum(yn * g[None, :, None] + bvec[None, :, None], 0.0)

    e1 = bn_relu(conv(x_ncl, params["enc1_w"], params["enc1_b"], 2, 3),
                 params["bn1_g"], params["bn1_b"])
    e2 = bn_relu(conv(e1, params["enc2_w"], params["enc2_b"], 2, 2),
                 params["bn2_g"], params["bn2_b"])
    d1 = bn_relu(convT(e2, params["dec1_w"], params["dec1_b"], 2, 1),
                 params["bn3_g"], params["bn3_b"])
    d2 = bn_relu(convT(d1 + e1, params["dec2_w"], params["dec2_b"], 2, 1),
                 params["bn4_g"], params["bn4_b"])
    return conv(d2, params["final_w"], params["final_b"], 1, 1)


# --------------------------------- params ------------------------------------

def init_params(key, in_channels, embed_dim):
    ks = jax.random.split(key, 16)
    E = embed_dim

    def nrm(k, shape, scale=0.1):
        return scale * jax.random.normal(k, shape, dtype=jnp.float32)

    return {
        "enc1_w": nrm(ks[0], (E, in_channels, 7)),
        "enc1_b": nrm(ks[1], (E,)),
        "bn1_g": 1.0 + nrm(ks[2], (E,)),
        "bn1_b": nrm(ks[3], (E,)),
        "enc2_w": nrm(ks[4], (2 * E, E, 5)),
        "enc2_b": nrm(ks[5], (2 * E,)),
        "bn2_g": 1.0 + nrm(ks[6], (2 * E,)),
        "bn2_b": nrm(ks[7], (2 * E,)),
        "dec1_w": nrm(ks[8], (2 * E, E, 4)),   # ConvTranspose1d weight (C_in, C_out, K)
        "dec1_b": nrm(ks[9], (E,)),
        "bn3_g": 1.0 + nrm(ks[10], (E,)),
        "bn3_b": nrm(ks[11], (E,)),
        "dec2_w": nrm(ks[12], (E, E, 4)),
        "dec2_b": nrm(ks[13], (E,)),
        "bn4_g": 1.0 + nrm(ks[14], (E,)),
        "bn4_b": nrm(ks[15], (E,)),
        "final_w": nrm(jax.random.fold_in(key, 99), (E, E, 3)),
        "final_b": nrm(jax.random.fold_in(key, 100), (E,)),
    }


if __name__ == "__main__":
    key = jax.random.PRNGKey(0)
    kx, kp = jax.random.split(key)

    batch, in_channels, length, embed_dim = 2, 4, 16, 8
    x = jax.random.normal(kx, (batch, in_channels, length), dtype=jnp.float32)  # NCL
    params = init_params(kp, in_channels, embed_dim)

    out = jax.jit(unet_cnn_embedding)(x, params)
    out = jax.block_until_ready(out)

    assert out.shape == (batch, embed_dim, length), out.shape
    assert bool(jnp.all(jnp.isfinite(out)))

    # loose-tolerance check vs f32 reference (kernel uses bf16 matmul inputs)
    ref = _ref_forward(x, params)
    max_err = float(jnp.max(jnp.abs(out - ref)))
    assert bool(jnp.allclose(out, ref, rtol=0.1, atol=0.25)), max_err

    print("KERNEL_OK")
</pallas_src>

<mosaic_0001>
module attributes {stable_mosaic.version = 11 : i64} {
  func.func @_mm_stats_kernel(%arg0: i32, %arg1: memref<16x32xbf16, #tpu.memory_space<vmem>>, %arg2: memref<32x128xbf16, #tpu.memory_space<vmem>>, %arg3: memref<1x128xf32, #tpu.memory_space<vmem>>, %arg4: memref<16x128xf32, #tpu.memory_space<vmem>>, %arg5: memref<1x128xf32, #tpu.memory_space<vmem>>, %arg6: memref<1x128xf32, #tpu.memory_space<vmem>>) attributes {dimension_semantics = [#tpu.dimension_semantics<arbitrary>], iteration_bounds = array<i64: 1>, scalar_prefetch = 0 : i64, scratch_operands = 0 : i64, tpu.core_type = #tpu.core_type<tc>, window_params = [{transform_indices = @transform_0, window_bounds = array<i64: 16, 32>}, {pipeline_mode = #tpu.pipeline_mode<synchronous>, transform_indices = @transform_1, window_bounds = array<i64: 32, 128>}, {pipeline_mode = #tpu.pipeline_mode<synchronous>, transform_indices = @transform_2, window_bounds = array<i64: 1, 128>}, {transform_indices = @transform_3, window_bounds = array<i64: 16, 128>}, {pipeline_mode = #tpu.pipeline_mode<synchronous>, transform_indices = @transform_4, window_bounds = array<i64: 1, 128>}, {pipeline_mode = #tpu.pipeline_mode<synchronous>, transform_indices = @transform_5, window_bounds = array<i64: 1, 128>}]} {
    %c0_i32 = arith.constant 0 : i32
    %0 = arith.cmpi eq, %arg0, %c0_i32 : i32
    %1 = arith.extui %0 : i1 to i32
    %c0_i32_0 = arith.constant 0 : i32
    %2 = arith.cmpi ne, %1, %c0_i32_0 : i32
    scf.if %2 {
      %cst_20 = arith.constant 0.000000e+00 : f32
      %31 = vector.broadcast %cst_20 : f32 to vector<1x128xf32>
      %c0_21 = arith.constant 0 : index
      %c0_22 = arith.constant 0 : index
      %32 = vector.load %arg5[%c0_21, %c0_22] : memref<1x128xf32, #tpu.memory_space<vmem>>, vector<1x128xf32>
      tpu.vector_store %arg5[%c0_21, %c0_22], %31 {strides = array<i32>} : memref<1x128xf32, #tpu.memory_space<vmem>>, vector<1x128xf32>,
      %cst_23 = arith.constant 0.000000e+00 : f32
      %33 = vector.broadcast %cst_23 : f32 to vector<1x128xf32>
      %c0_24 = arith.constant 0 : index
      %c0_25 = arith.constant 0 : index
      %34 = vector.load %arg6[%c0_24, %c0_25] : memref<1x128xf32, #tpu.memory_space<vmem>>, vector<1x128xf32>
      tpu.vector_store %arg6[%c0_24, %c0_25], %33 {strides = array<i32>} : memref<1x128xf32, #tpu.memory_space<vmem>>, vector<1x128xf32>,
    } else {
    }
    %c0 = arith.constant 0 : index
    %c0_1 = arith.constant 0 : index
    %3 = vector.load %arg1[%c0, %c0_1] : memref<16x32xbf16, #tpu.memory_space<vmem>>, vector<16x32xbf16>
    %c0_2 = arith.constant 0 : index
    %c0_3 = arith.constant 0 : index
    %4 = vector.load %arg2[%c0_2, %c0_3] : memref<32x128xbf16, #tpu.memory_space<vmem>>, vector<32x128xbf16>
    %cst = arith.constant dense<0.000000e+00> : vector<16x128xf32>
    %5 = tpu.matmul %3, %4, %cst {dimension_numbers = #tpu.dot_dimension_numbers<[1], [0], [0], [1], [0, 0, 1, 1], [], []>} : vector<16x32xbf16>, vector<32x128xbf16>, vector<16x128xf32> -> vector<16x128xf32>
    %c0_4 = arith.constant 0 : index
    %c0_5 = arith.constant 0 : index
    %6 = vector.load %arg3[%c0_4, %c0_5] : memref<1x128xf32, #tpu.memory_space<vmem>>, vector<1x128xf32>
    %7 = vector.broadcast %6 : vector<1x128xf32> to vector<16x128xf32>
    %8 = arith.addf %5, %7 : vector<16x128xf32>
    %c0_6 = arith.constant 0 : index
    %c0_7 = arith.constant 0 : index
    %9 = vector.load %arg4[%c0_6, %c0_7] : memref<16x128xf32, #tpu.memory_space<vmem>>, vector<16x128xf32>
    tpu.vector_store %arg4[%c0_6, %c0_7], %8 {strides = array<i32>} : memref<16x128xf32, #tpu.memory_space<vmem>>, vector<16x128xf32>,
    %c16_i32 = arith.constant 16 : i32
    %10 = arith.muli %arg0, %c16_i32 : i32
    %11 = tpu.iota {dimensions = array<i32: 0>} : vector<16x1xi32>
    %12 = vector.broadcast %10 : i32 to vector<16x1xi32>
    %13 = arith.addi %12, %11 : vector<16x1xi32>
    %c16_i32_8 = arith.constant 16 : i32
    %14 = vector.broadcast %c16_i32_8 : i32 to vector<16x1xi32>
    %15 = arith.cmpi slt, %13, %14 : vector<16x1xi32>
    %cst_9 = arith.constant 0.000000e+00 : f32
    %16 = vector.shape_cast %15 : vector<16x1xi1> to vector<16x1xi1>
    %17 = vector.broadcast %16 : vector<16x1xi1> to vector<16x128xi1>
    %18 = vector.broadcast %cst_9 : f32 to vector<16x128xf32>
    %19 = arith.select %17, %8, %18 : vector<16x128xi1>, vector<16x128xf32>
    %c0_10 = arith.constant 0 : index
    %c0_11 = arith.constant 0 : index
    %20 = vector.load %arg5[%c0_10, %c0_11] : memref<1x128xf32, #tpu.memory_space<vmem>>, vector<1x128xf32>
    %cst_12 = arith.constant dense<0.000000e+00> : vector<128xf32>
    %21 = vector.multi_reduction <add>, %19, %cst_12 [0] : vector<16x128xf32> to vector<128xf32>
    %22 = vector.shape_cast %21 : vector<128xf32> to vector<1x128xf32>
    %23 = arith.addf %20, %22 : vector<1x128xf32>
    %c0_13 = arith.constant 0 : index
    %c0_14 = arith.constant 0 : index
    %24 = vector.load %arg5[%c0_13, %c0_14] : memref<1x128xf32, #tpu.memory_space<vmem>>, vector<1x128xf32>
    tpu.vector_store %arg5[%c0_13, %c0_14], %23 {strides = array<i32>} : memref<1x128xf32, #tpu.memory_space<vmem>>, vector<1x128xf32>,
    %c0_15 = arith.constant 0 : index
    %c0_16 = arith.constant 0 : index
    %25 = vector.load %arg6[%c0_15, %c0_16] : memref<1x128xf32, #tpu.memory_space<vmem>>, vector<1x128xf32>
    %26 = arith.mulf %19, %19 : vector<16x128xf32>
    %cst_17 = arith.constant dense<0.000000e+00> : vector<128xf32>
    %27 = vector.multi_reduction <add>, %26, %cst_17 [0] : vector<16x128xf32> to vector<128xf32>
    %28 = vector.shape_cast %27 : vector<128xf32> to vector<1x128xf32>
    %29 = arith.addf %25, %28 : vector<1x128xf32>
    %c0_18 = arith.constant 0 : index
    %c0_19 = arith.constant 0 : index
    %30 = vector.load %arg6[%c0_18, %c0_19] : memref<1x128xf32, #tpu.memory_space<vmem>>, vector<1x128xf32>
    tpu.vector_store %arg6[%c0_18, %c0_19], %29 {strides = array<i32>} : memref<1x128xf32, #tpu.memory_space<vmem>>, vector<1x128xf32>,
    return
  }
  func.func @transform_0(%arg0: i32) -> (i32, i32) {
    %c0_i32 = arith.constant 0 : i32
    %c0_i32_0 = arith.constant 0 : i32
    return %arg0, %c0_i32 : i32, i32
  }
  func.func @transform_1(%arg0: i32) -> (i32, i32) {
    %c0_i32 = arith.constant 0 : i32
    %c0_i32_0 = arith.constant 0 : i32
    %c0_i32_1 = arith.constant 0 : i32
    return %c0_i32, %c0_i32_0 : i32, i32
  }
  func.func @transform_2(%arg0: i32) -> (i32, i32) {
    %c0_i32 = arith.constant 0 : i32
    %c0_i32_0 = arith.constant 0 : i32
    %c0_i32_1 = arith.constant 0 : i32
    return %c0_i32, %c0_i32_0 : i32, i32
  }
  func.func @transform_3(%arg0: i32) -> (i32, i32) {
    %c0_i32 = arith.constant 0 : i32
    %c0_i32_0 = arith.constant 0 : i32
    return %arg0, %c0_i32 : i32, i32
  }
  func.func @transform_4(%arg0: i32) -> (i32, i32) {
    %c0_i32 = arith.constant 0 : i32
    %c0_i32_0 = arith.constant 0 : i32
    %c0_i32_1 = arith.constant 0 : i32
    return %c0_i32, %c0_i32_0 : i32, i32
  }
  func.func @transform_5(%arg0: i32) -> (i32, i32) {
    %c0_i32 = arith.constant 0 : i32
    %c0_i32_0 = arith.constant 0 : i32
    %c0_i32_1 = arith.constant 0 : i32
    return %c0_i32, %c0_i32_0 : i32, i32
  }
}

module attributes {stable_mosaic.version = 11 : i64} {
  func.func @_scale_shift_relu_kernel(%arg0: i32, %arg1: memref<16x128xf32, #tpu.memory_space<vmem>>, %arg2: memref<1x128xf32, #tpu.memory_space<vmem>>, %arg3: memref<1x128xf32, #tpu.memory_space<vmem>>, %arg4: memref<16x128xf32, #tpu.memory_space<vmem>>) attributes {dimension_semantics = [#tpu.dimension_semantics<parallel>], iteration_bounds = array<i64: 1>, scalar_prefetch = 0 : i64, scratch_operands = 0 : i64, tpu.core_type = #tpu.core_type<tc>, window_params = [{transform_indices = @transform_0, window_bounds = array<i64: 16, 128>}, {pipeline_mode = #tpu.pipeline_mode<synchronous>, transform_indices = @transform_1, window_bounds = array<i64: 1, 128>}, {pipeline_mode = #tpu.pipeline_mode<synchronous>, transform_indices = @transform_2, window_bounds = array<i64: 1, 128>}, {transform_indices = @transform_3, window_bounds = array<i64: 16, 128>}]} {
    %c0 = arith.constant 0 : index
    %c0_0 = arith.constant 0 : index
    %0 = vector.load %arg1[%c0, %c0_0] : memref<16x128xf32, #tpu.memory_space<vmem>>, vector<16x128xf32>
    %c0_1 = arith.constant 0 : index
    %c0_2 = arith.constant 0 : index
    %1 = vector.load %arg2[%c0_1, %c0_2] : memref<1x128xf32, #tpu.memory_space<vmem>>, vector<1x128xf32>
    %2 = vector.broadcast %1 : vector<1x128xf32> to vector<16x128xf32>
    %3 = arith.mulf %0, %2 : vector<16x128xf32>
    %c0_3 = arith.constant 0 : index
    %c0_4 = arith.constant 0 : index
    %4 = vector.load %arg3[%c0_3, %c0_4] : memref<1x128xf32, #tpu.memory_space<vmem>>, vector<1x128xf32>
    %5 = vector.broadcast %4 : vector<1x128xf32> to vector<16x128xf32>
    %6 = arith.addf %3, %5 : vector<16x128xf32>
    %cst = arith.constant 0.000000e+00 : f32
    %7 = vector.broadcast %cst : f32 to vector<16x128xf32>
    %8 = arith.maximumf %6, %7 : vector<16x128xf32>
    %c0_5 = arith.constant 0 : index
    %c0_6 = arith.constant 0 : index
    %9 = vector.load %arg4[%c0_5, %c0_6] : memref<16x128xf32, #tpu.memory_space<vmem>>, vector<16x128xf32>
    tpu.vector_store %arg4[%c0_5, %c0_6], %8 {strides = array<i32>} : memref<16x128xf32, #tpu.memory_space<vmem>>, vector<16x128xf32>,
    return
  }
  func.func @transform_0(%arg0: i32) -> (i32, i32) {
    %c0_i32 = arith.constant 0 : i32
    %c0_i32_0 = arith.constant 0 : i32
    return %arg0, %c0_i32 : i32, i32
  }
  func.func @transform_1(%arg0: i32) -> (i32, i32) {
    %c0_i32 = arith.constant 0 : i32
    %c0_i32_0 = arith.constant 0 : i32
    %c0_i32_1 = arith.constant 0 : i32
    return %c0_i32, %c0_i32_0 : i32, i32
  }
  func.func @transform_2(%arg0: i32) -> (i32, i32) {
    %c0_i32 = arith.constant 0 : i32
    %c0_i32_0 = arith.constant 0 : i32
    %c0_i32_1 = arith.constant 0 : i32
    return %c0_i32, %c0_i32_0 : i32, i32
  }
  func.func @transform_3(%arg0: i32) -> (i32, i32) {
    %c0_i32 = arith.constant 0 : i32
    %c0_i32_0 = arith.constant 0 : i32
    return %arg0, %c0_i32 : i32, i32
  }
}

module attributes {stable_mosaic.version = 11 : i64} {
  func.func @_mm_stats_kernel(%arg0: i32, %arg1: memref<16x48xbf16, #tpu.memory_space<vmem>>, %arg2: memref<48x128xbf16, #tpu.memory_space<vmem>>, %arg3: memref<1x128xf32, #tpu.memory_space<vmem>>, %arg4: memref<16x128xf32, #tpu.memory_space<vmem>>, %arg5: memref<1x128xf32, #tpu.memory_space<vmem>>, %arg6: memref<1x128xf32, #tpu.memory_space<vmem>>) attributes {dimension_semantics = [#tpu.dimension_semantics<arbitrary>], iteration_bounds = array<i64: 1>, scalar_prefetch = 0 : i64, scratch_operands = 0 : i64, tpu.core_type = #tpu.core_type<tc>, window_params = [{transform_indices = @transform_0, window_bounds = array<i64: 16, 48>}, {pipeline_mode = #tpu.pipeline_mode<synchronous>, transform_indices = @transform_1, window_bounds = array<i64: 48, 128>}, {pipeline_mode = #tpu.pipeline_mode<synchronous>, transform_indices = @transform_2, window_bounds = array<i64: 1, 128>}, {transform_indices = @transform_3, window_bounds = array<i64: 16, 128>}, {pipeline_mode = #tpu.pipeline_mode<synchronous>, transform_indices = @transform_4, window_bounds = array<i64: 1, 128>}, {pipeline_mode = #tpu.pipeline_mode<synchronous>, transform_indices = @transform_5, window_bounds = array<i64: 1, 128>}]} {
    %c0_i32 = arith.constant 0 : i32
    %0 = arith.cmpi eq, %arg0, %c0_i32 : i32
    %1 = arith.extui %0 : i1 to i32
    %c0_i32_0 = arith.constant 0 : i32
    %2 = arith.cmpi ne, %1, %c0_i32_0 : i32
    scf.if %2 {
      %cst_19 = arith.constant 0.000000e+00 : f32
      %31 = vector.broadcast %cst_19 : f32 to vector<1x128xf32>
      %c0_20 = arith.constant 0 : index
      %c0_21 = arith.constant 0 : index
      %32 = vector.load %arg5[%c0_20, %c0_21] : memref<1x128xf32, #tpu.memory_space<vmem>>, vector<1x128xf32>
      tpu.vector_store %arg5[%c0_20, %c0_21], %31 {strides = array<i32>} : memref<1x128xf32, #tpu.memory_space<vmem>>, vector<1x128xf32>,
      %cst_22 = arith.constant 0.000000e+00 : f32
      %33 = vector.broadcast %cst_22 : f32 to vector<1x128xf32>
      %c0_23 = arith.constant 0 : index
      %c0_24 = arith.constant 0 : index
      %34 = vector.load %arg6[%c0_23, %c0_24] : memref<1x128xf32, #tpu.memory_space<vmem>>, vector<1x128xf32>
      tpu.vector_store %arg6[%c0_23, %c0_24], %33 {strides = array<i32>} : memref<1x128xf32, #tpu.memory_space<vmem>>, vector<1x128xf32>,
    } else {
    }
    %c0 = arith.constant 0 : index
    %c0_1 = arith.constant 0 : index
    %3 = vector.load %arg1[%c0, %c0_1] : memref<16x48xbf16, #tpu.memory_space<vmem>>, vector<16x48xbf16>
    %c0_2 = arith.constant 0 : index
    %c0_3 = arith.constant 0 : index
    %4 = vector.load %arg2[%c0_2, %c0_3] : memref<48x128xbf16, #tpu.memory_space<vmem>>, vector<48x128xbf16>
    %cst = arith.constant dense<0.000000e+00> : vector<16x128xf32>
    %5 = tpu.matmul %3, %4, %cst {dimension_numbers = #tpu.dot_dimension_numbers<[1], [0], [0], [1], [0, 0, 1, 1], [], []>} : vector<16x48xbf16>, vector<48x128xbf16>, vector<16x128xf32> -> vector<16x128xf32>
    %c0_4 = arith.constant 0 : index
    %c0_5 = arith.constant 0 : index
    %6 = vector.load %arg3[%c0_4, %c0_5] : memref<1x128xf32, #tpu.memory_space<vmem>>, vector<1x128xf32>
    %7 = vector.broadcast %6 : vector<1x128xf32> to vector<16x128xf32>
    %8 = arith.addf %5, %7 : vector<16x128xf32>
    %c0_6 = arith.constant 0 : index
    %c0_7 = arith.constant 0 : index
    %9 = vector.load %arg4[%c0_6, %c0_7] : memref<16x128xf32, #tpu.memory_space<vmem>>, vector<16x128xf32>
    tpu.vector_store %arg4[%c0_6, %c0_7], %8 {strides = array<i32>} : memref<16x128xf32, #tpu.memory_space<vmem>>, vector<16x128xf32>,
    %c16_i32 = arith.constant 16 : i32
    %10 = arith.muli %arg0, %c16_i32 : i32
    %11 = tpu.iota {dimensions = array<i32: 0>} : vector<16x1xi32>
    %12 = vector.broadcast %10 : i32 to vector<16x1xi32>
    %13 = arith.addi %12, %11 : vector<16x1xi32>
    %c8_i32 = arith.constant 8 : i32
    %14 = vector.broadcast %c8_i32 : i32 to vector<16x1xi32>
    %15 = arith.cmpi slt, %13, %14 : vector<16x1xi32>
    %cst_8 = arith.constant 0.000000e+00 : f32
    %16 = vector.shape_cast %15 : vector<16x1xi1> to vector<16x1xi1>
    %17 = vector.broadcast %16 : vector<16x1xi1> to vector<16x128xi1>
    %18 = vector.broadcast %cst_8 : f32 to vector<16x128xf32>
    %19 = arith.select %17, %8, %18 : vector<16x128xi1>, vector<16x128xf32>
    %c0_9 = arith.constant 0 : index
    %c0_10 = arith.constant 0 : index
    %20 = vector.load %arg5[%c0_9, %c0_10] : memref<1x128xf32, #tpu.memory_space<vmem>>, vector<1x128xf32>
    %cst_11 = arith.constant dense<0.000000e+00> : vector<128xf32>
    %21 = vector.multi_reduction <add>, %19, %cst_11 [0] : vector<16x128xf32> to vector<128xf32>
    %22 = vector.shape_cast %21 : vector<128xf32> to vector<1x128xf32>
    %23 = arith.addf %20, %22 : vector<1x128xf32>
    %c0_12 = arith.constant 0 : index
    %c0_13 = arith.constant 0 : index
    %24 = vector.load %arg5[%c0_12, %c0_13] : memref<1x128xf32, #tpu.memory_space<vmem>>, vector<1x128xf32>
    tpu.vector_store %arg5[%c0_12, %c0_13], %23 {strides = array<i32>} : memref<1x128xf32, #tpu.memory_space<vmem>>, vector<1x128xf32>,
    %c0_14 = arith.constant 0 : index
    %c0_15 = arith.constant 0 : index
    %25 = vector.load %arg6[%c0_14, %c0_15] : memref<1x128xf32, #tpu.memory_space<vmem>>, vector<1x128xf32>
    %26 = arith.mulf %19, %19 : vector<16x128xf32>
    %cst_16 = arith.constant dense<0.000000e+00> : vector<128xf32>
    %27 = vector.multi_reduction <add>, %26, %cst_16 [0] : vector<16x128xf32> to vector<128xf32>
    %28 = vector.shape_cast %27 : vector<128xf32> to vector<1x128xf32>
    %29 = arith.addf %25, %28 : vector<1x128xf32>
    %c0_17 = arith.constant 0 : index
    %c0_18 = arith.constant 0 : index
    %30 = vector.load %arg6[%c0_17, %c0_18] : memref<1x128xf32, #tpu.memory_space<vmem>>, vector<1x128xf32>
    tpu.vector_store %arg6[%c0_17, %c0_18], %29 {strides = array<i32>} : memref<1x128xf32, #tpu.memory_space<vmem>>, vector<1x128xf32>,
    return
  }
  func.func @transform_0(%arg0: i32) -> (i32, i32) {
    %c0_i32 = arith.constant 0 : i32
    %c0_i32_0 = arith.constant 0 : i32
    return %arg0, %c0_i32 : i32, i32
  }
  func.func @transform_1(%arg0: i32) -> (i32, i32) {
    %c0_i32 = arith.constant 0 : i32
    %c0_i32_0 = arith.constant 0 : i32
    %c0_i32_1 = arith.constant 0 : i32
    return %c0_i32, %c0_i32_0 : i32, i32
  }
  func.func @transform_2(%arg0: i32) -> (i32, i32) {
    %c0_i32 = arith.constant 0 : i32
    %c0_i32_0 = arith.constant 0 : i32
    %c0_i32_1 = arith.constant 0 : i32
    return %c0_i32, %c0_i32_0 : i32, i32
  }
  func.func @transform_3(%arg0: i32) -> (i32, i32) {
    %c0_i32 = arith.constant 0 : i32
    %c0_i32_0 = arith.constant 0 : i32
    return %arg0, %c0_i32 : i32, i32
  }
  func.func @transform_4(%arg0: i32) -> (i32, i32) {
    %c0_i32 = arith.constant 0 : i32
    %c0_i32_0 = arith.constant 0 : i32
    %c0_i32_1 = arith.constant 0 : i32
    return %c0_i32, %c0_i32_0 : i32, i32
  }
  func.func @transform_5(%arg0: i32) -> (i32, i32) {
    %c0_i32 = arith.constant 0 : i32
    %c0_i32_0 = arith.constant 0 : i32
    %c0_i32_1 = arith.constant 0 : i32
    return %c0_i32, %c0_i32_0 : i32, i32
  }
}

module attributes {stable_mosaic.version = 11 : i64} {
  func.func @_mm_bias_kernel(%arg0: i32, %arg1: memref<32x32xbf16, #tpu.memory_space<vmem>>, %arg2: memref<32x128xbf16, #tpu.memory_space<vmem>>, %arg3: memref<1x128xf32, #tpu.memory_space<vmem>>, %arg4: memref<32x128xf32, #tpu.memory_space<vmem>>) attributes {dimension_semantics = [#tpu.dimension_semantics<parallel>], iteration_bounds = array<i64: 1>, scalar_prefetch = 0 : i64, scratch_operands = 0 : i64, tpu.core_type = #tpu.core_type<tc>, window_params = [{transform_indices = @transform_0, window_bounds = array<i64: 32, 32>}, {pipeline_mode = #tpu.pipeline_mode<synchronous>, transform_indices = @transform_1, window_bounds = array<i64: 32, 128>}, {pipeline_mode = #tpu.pipeline_mode<synchronous>, transform_indices = @transform_2, window_bounds = array<i64: 1, 128>}, {transform_indices = @transform_3, window_bounds = array<i64: 32, 128>}]} {
    %c0 = arith.constant 0 : index
    %c0_0 = arith.constant 0 : index
    %0 = vector.load %arg1[%c0, %c0_0] : memref<32x32xbf16, #tpu.memory_space<vmem>>, vector<32x32xbf16>
    %c0_1 = arith.constant 0 : index
    %c0_2 = arith.constant 0 : index
    %1 = vector.load %arg2[%c0_1, %c0_2] : memref<32x128xbf16, #tpu.memory_space<vmem>>, vector<32x128xbf16>
    %cst = arith.constant dense<0.000000e+00> : vector<32x128xf32>
    %2 = tpu.matmul %0, %1, %cst {dimension_numbers = #tpu.dot_dimension_numbers<[1], [0], [0], [1], [0, 0, 1, 1], [], []>} : vector<32x32xbf16>, vector<32x128xbf16>, vector<32x128xf32> -> vector<32x128xf32>
    %c0_3 = arith.constant 0 : index
    %c0_4 = arith.constant 0 : index
    %3 = vector.load %arg3[%c0_3, %c0_4] : memref<1x128xf32, #tpu.memory_space<vmem>>, vector<1x128xf32>
    %4 = vector.broadcast %3 : vector<1x128xf32> to vector<32x128xf32>
    %5 = arith.addf %2, %4 : vector<32x128xf32>
    %c0_5 = arith.constant 0 : index
    %c0_6 = arith.constant 0 : index
    %6 = vector.load %arg4[%c0_5, %c0_6] : memref<32x128xf32, #tpu.memory_space<vmem>>, vector<32x128xf32>
    tpu.vector_store %arg4[%c0_5, %c0_6], %5 {strides = array<i32>} : memref<32x128xf32, #tpu.memory_space<vmem>>, vector<32x128xf32>,
    return
  }
  func.func @transform_0(%arg0: i32) -> (i32, i32) {
    %c0_i32 = arith.constant 0 : i32
    %c0_i32_0 = arith.constant 0 : i32
    return %arg0, %c0_i32 : i32, i32
  }
  func.func @transform_1(%arg0: i32) -> (i32, i32) {
    %c0_i32 = arith.constant 0 : i32
    %c0_i32_0 = arith.constant 0 : i32
    %c0_i32_1 = arith.constant 0 : i32
    return %c0_i32, %c0_i32_0 : i32, i32
  }
  func.func @transform_2(%arg0: i32) -> (i32, i32) {
    %c0_i32 = arith.constant 0 : i32
    %c0_i32_0 = arith.constant 0 : i32
    %c0_i32_1 = arith.constant 0 : i32
    return %c0_i32, %c0_i32_0 : i32, i32
  }
  func.func @transform_3(%arg0: i32) -> (i32, i32) {
    %c0_i32 = arith.constant 0 : i32
    %c0_i32_0 = arith.constant 0 : i32
    return %arg0, %c0_i32 : i32, i32
  }
}

</mosaic_0001>

<bundles_post_ra>
// kernel: unet_cnn_embedding.9
= control target key start
LH: loop header
LB: loop body
LE: loop exit
PB: predicated region body
PF: predicated region fallthrough
CT: control target
= control target key end

     0   :  { %v171_v0 = vmov 0.0   ;;  %vm172_vm0 = vmmov 0   ;;  %vm54_vm1 = vcmask 261120   ;;  %s239_s4 = inlined_call_operand.vmem [shape: f32[1,128], index: 4, kind: output, shape index: {1}]   ;;  %s240_s5 = inlined_call_operand.vmem [shape: f32[1,128], index: 5, kind: output, shape index: {2}]   ;;  %s241_s1 = inlined_call_operand.vmem [shape: bf16[32,128], index: 1, kind: input, shape index: {}]   ;;  %s242_s0 = inlined_call_operand.vmem [shape: bf16[16,32], index: 0, kind: input, shape index: {}]   ;;  %s243_s2 = inlined_call_operand.vmem [shape: f32[1,128], index: 2, kind: input, shape index: {}]   ;;  %s244_s3 = inlined_call_operand.vmem [shape: f32[16,128], index: 3, kind: output, shape index: {0}]  }
   0x1   :  { %22 = vst [vmem:[%s239_s4] sm:$0x1] %v171_v0  ;;  %23 = vst [vmem:[%s240_s5] sm:$0x1] %v171_v0  ;;  %158 = vmatprep.subr.bf16.mxu0 %v171_v0  ;;  %v168_v1 = vld [vmem:[%s241_s1 + $0x8] sm:$0xff]   ;;  %162 = vmatprep.mubr.msk.bf16.mxu0 %vm172_vm0, %v171_v0  ;;  %v169_v2 = vld [vmem:[%s241_s1] sm:$0xff]  }
   0x2   :  { %159 = vmatpush3.bf16.msra.mxu0 %v168_v1  ;;  %v170_v3 = vld [vmem:[%s242_s0] sm:$0xff]  }
   0x3   :  { %160 = vmatprep.subr.bf16.mxu0 %v171_v0  ;;  %v150_v4 = vld [vmem:[%s243_s2] ss:$0 sm:$0xff] }
   0x6   :  { %161 = vmatpush3.bf16.msra.mxu0 %v169_v2 }
   0x8   :  { %v116_v24 = vld [vmem:[%s239_s4] sm:$0x1] }
   0x9   :  { %163 = vmatmul.mubr.msk.bf16.vlgmr.msra.gmra.mxu0 %vm54_vm1, %v170_v3  ;;  %v126_v27 = vld [vmem:[%s240_s5] sm:$0x1] }
  0xc9   :  { %v92_v5 = vpop.f32.mrf.mxu0 }
  0xca   :  { %v93_v6 = vadd.f32 %v150_v4, %v92_v5 }
  0xcb   :  { %v164_v7 = vpop.f32.mrf.mxu0 }
  0xcc   :  { %99 = vst [vmem:[%s244_s3] sm:$0xff] %v93_v6  ;;  %v127_v11 = vmul.f32 %v93_v6, %v93_v6 }
  0xcd   :  { %v95_v8 = vpop.f32.mrf.mxu0 }
  0xce   :  { %v96_v9 = vadd.f32 %v150_v4, %v95_v8 }
  0xcf   :  { %v165_v10 = vpop.f32.mrf.mxu0 }
  0xd0   :  { %100 = vst [vmem:[%s244_s3 + $0x8] sm:$0xff] %v96_v9  ;;  %v117_v12 = vadd.f32 %v96_v9, %v93_v6  ;;  %v128_v13 = vmul.f32 %v96_v9, %v96_v9 }
  0xd2   :  { %v118_v14 = vrot.slane %v117_v12, 4  ;;  %v129_v15 = vadd.f32 %v128_v13, %v127_v11 }
  0xd4   :  { %v119_v16 = vadd.f32 %v118_v14, %v117_v12  ;;  %v130_v17 = vrot.slane %v129_v15, 4 }
  0xd6   :  { %v120_v18 = vrot.slane %v119_v16, 2  ;;  %v131_v19 = vadd.f32 %v130_v17, %v129_v15 }
  0xd8   :  { %v121_v20 = vadd.f32 %v120_v18, %v119_v16  ;;  %v132_v21 = vrot.slane %v131_v19, 2 }
  0xda   :  { %v122_v22 = vrot.slane %v121_v20, 1  ;;  %v133_v23 = vadd.f32 %v132_v21, %v131_v19 }
  0xdc   :  { %v123_v25 = vadd.f32 %v122_v22, %v121_v20  ;;  %v134_v26 = vrot.slane %v133_v23, 1 }
  0xde   :  { %v124_v28 = vadd.f32 %v123_v25, %v116_v24  ;;  %v135_v29 = vadd.f32 %v134_v26, %v133_v23 }
  0xe0   :  { %125 = vst [vmem:[%s239_s4] sm:$0x1] %v124_v28  ;;  %v136_v30 = vadd.f32 %v135_v29, %v126_v27 }
  0xe2   :  { %137 = vst [vmem:[%s240_s5] sm:$0x1] %v136_v30 }

// kernel: unet_cnn_embedding.10
= control target key start
LH: loop header
LB: loop body
LE: loop exit
PB: predicated region body
PF: predicated region fallthrough
CT: control target
= control target key end

     0   :  { %s82_s0 = inlined_call_operand.vmem [shape: f32[16,128], index: 0, kind: input, shape index: {}]   ;;  %s83_s1 = inlined_call_operand.vmem [shape: f32[1,128], index: 1, kind: input, shape index: {}]   ;;  %s84_s2 = inlined_call_operand.vmem [shape: f32[1,128], index: 2, kind: input, shape index: {}]   ;;  %s85_s3 = inlined_call_operand.vmem [shape: f32[16,128], index: 3, kind: output, shape index: {}]  }
   0x1   :  { %v14_v0 = vld [vmem:[%s82_s0] sm:$0xff]  ;;  %v15_v4 = vld [vmem:[%s82_s0 + $0x8] sm:$0xff] }
   0x2   :  { %v42_v1 = vld [vmem:[%s83_s1] ss:$0 sm:$0xff] }
   0x3   :  { %v43_v2 = vld [vmem:[%s84_s2] ss:$0 sm:$0xff]  ;;  %v23_v3 = vmul.f32 %v42_v1, %v14_v0  ;;  %v24_v5 = vmul.f32 %v42_v1, %v15_v4 }
   0x5   :  { %v32_v6 = vadd.f32 %v43_v2, %v23_v3  ;;  %v33_v7 = vadd.f32 %v43_v2, %v24_v5 }
   0x7   :  { %v34_v8 = vmax.f32 %v32_v6, 0.0  ;;  %v35_v9 = vmax.f32 %v33_v7, 0.0 }
   0x9   :  { %36 = vst [vmem:[%s85_s3] sm:$0xff] %v34_v8  ;;  %37 = vst [vmem:[%s85_s3 + $0x8] sm:$0xff] %v35_v9 }

// kernel: unet_cnn_embedding.11
= control target key start
LH: loop header
LB: loop body
LE: loop exit
PB: predicated region body
PF: predicated region fallthrough
CT: control target
= control target key end

     0   :  { %v184_v0 = vmov 0.0   ;;  %vm185_vm0 = vmmov 0   ;;  %vm62_vm1 = vcmask 392192   ;;  %s255_s4 = inlined_call_operand.vmem [shape: f32[1,128], index: 4, kind: output, shape index: {1}]   ;;  %s256_s5 = inlined_call_operand.vmem [shape: f32[1,128], index: 5, kind: output, shape index: {2}]   ;;  %s257_s1 = inlined_call_operand.vmem [shape: bf16[48,128], index: 1, kind: input, shape index: {}]   ;;  %s258_s0 = inlined_call_operand.vmem [shape: bf16[16,48], index: 0, kind: input, shape index: {}]   ;;  %s259_s2 = inlined_call_operand.vmem [shape: f32[1,128], index: 2, kind: input, shape index: {}]   ;;  %s260_s3 = inlined_call_operand.vmem [shape: f32[16,128], index: 3, kind: output, shape index: {0}]  }
   0x1   :  { %22 = vst [vmem:[%s255_s4] sm:$0x1] %v184_v0  ;;  %23 = vst [vmem:[%s256_s5] sm:$0x1] %v184_v0  ;;  %168 = vmatprep.subr.bf16.mxu0 %v184_v0  ;;  %v180_v1 = vld [vmem:[%s257_s1 + $0x10] sm:$0xff]   ;;  %174 = vmatprep.mubr.msk.bf16.mxu0 %vm185_vm0, %v184_v0  ;;  %v181_v2 = vld [vmem:[%s257_s1 + $0x8] sm:$0xff]  }
   0x2   :  { %169 = vmatpush3.bf16.msra.mxu0 %v180_v1  ;;  %v182_v3 = vld [vmem:[%s257_s1] sm:$0xff]  }
   0x3   :  { %170 = vmatprep.subr.bf16.mxu0 %v184_v0  ;;  %v183_v4 = vld [vmem:[%s258_s0] sm:$0xff]  }
   0x4   :  { %v158_v5 = vld [vmem:[%s259_s2] ss:$0 sm:$0xff] }
   0x6   :  { %171 = vmatpush3.bf16.msra.mxu0 %v181_v2 }
   0x7   :  { %172 = vmatprep.subr.bf16.mxu0 %v184_v0 }
   0x8   :  { %v124_v22 = vld [vmem:[%s255_s4] sm:$0x1] }
   0x9   :  { %v134_v25 = vld [vmem:[%s256_s5] sm:$0x1] }
   0xa   :  { %173 = vmatpush3.bf16.msra.mxu0 %v182_v3 }
   0xd   :  { %175 = vmatmul.mubr.msk.bf16.vlgmr.msra.gmra.mxu0 %vm62_vm1, %v183_v4 }
  0xcd   :  { %v100_v6 = vpop.f32.mrf.mxu0 }
  0xce   :  { %v101_v7 = vadd.f32 %v158_v5, %v100_v6 }
  0xcf   :  { %v176_v8 = vpop.f32.mrf.mxu0 }
  0xd0   :  { %v126_v9 = vrot.slane %v101_v7, 4  ;;  %v135_v10 = vmul.f32 %v101_v7, %v101_v7  ;;  %107 = vst [vmem:[%s260_s3] sm:$0xff] %v101_v7 }
  0xd1   :  { %v103_v11 = vpop.f32.mrf.mxu0 }
  0xd2   :  { %v127_v12 = vadd.f32 %v126_v9, %v101_v7  ;;  %v138_v13 = vrot.slane %v135_v10, 4  ;;  %v104_v14 = vadd.f32 %v158_v5, %v103_v11 }
  0xd3   :  { %v177_v15 = vpop.f32.mrf.mxu0 }
  0xd4   :  { %v128_v16 = vrot.slane %v127_v12, 2  ;;  %v139_v17 = vadd.f32 %v138_v13, %v135_v10  ;;  %108 = vst [vmem:[%s260_s3 + $0x8] sm:$0xff] %v104_v14 }
  0xd6   :  { %v129_v18 = vadd.f32 %v128_v16, %v127_v12  ;;  %v140_v19 = vrot.slane %v139_v17, 2 }
  0xd8   :  { %v130_v20 = vrot.slane %v129_v18, 1  ;;  %v141_v21 = vadd.f32 %v140_v19, %v139_v17 }
  0xda   :  { %v131_v23 = vadd.f32 %v130_v20, %v129_v18  ;;  %v142_v24 = vrot.slane %v141_v21, 1 }
  0xdc   :  { %v132_v26 = vadd.f32 %v131_v23, %v124_v22  ;;  %v143_v27 = vadd.f32 %v142_v24, %v141_v21 }
  0xde   :  { %133 = vst [vmem:[%s255_s4] sm:$0x1] %v132_v26  ;;  %v144_v28 = vadd.f32 %v143_v27, %v134_v25 }
  0xe0   :  { %145 = vst [vmem:[%s256_s5] sm:$0x1] %v144_v28 }

// kernel: unet_cnn_embedding.17
= control target key start
LH: loop header
LB: loop body
LE: loop exit
PB: predicated region body
PF: predicated region fallthrough
CT: control target
= control target key end

     0   :  { %vm52_vm0 = vcmask 261120   ;;  %s186_s1 = inlined_call_operand.vmem [shape: bf16[32,128], index: 1, kind: input, shape index: {}]   ;;  %s187_s0 = inlined_call_operand.vmem [shape: bf16[32,32], index: 0, kind: input, shape index: {}]   ;;  %s188_s2 = inlined_call_operand.vmem [shape: f32[1,128], index: 2, kind: input, shape index: {}]   ;;  %s189_s3 = inlined_call_operand.vmem [shape: f32[32,128], index: 3, kind: output, shape index: {}]  }
   0x1   :  { %v135_v0 = vld [vmem:[%s186_s1 + $0x8] sm:$0xff]   ;;  %v136_v1 = vld [vmem:[%s186_s1] sm:$0xff]  }
   0x2   :  { %127 = vmatprep.subr.bf16.mxu0 %v135_v0  ;;  %v137_v2 = vld [vmem:[%s187_s0] sm:$0xff]   ;;  %v138_v3 = vld [vmem:[%s187_s0 + $0x8] sm:$0xff]  }
   0x3   :  { %128 = vmatpush3.bf16.msra.mxu0 %v135_v0  ;;  %131 = vmatprep.mubr.msk.bf16.mxu0 %vm52_vm0, %v137_v2  ;;  %v116_v4 = vld [vmem:[%s188_s2] ss:$0 sm:$0xff] }
   0x4   :  { %129 = vmatprep.subr.bf16.mxu0 %v136_v1 }
   0x7   :  { %130 = vmatpush3.bf16.msra.mxu0 %v136_v1 }
   0xa   :  { %132 = vmatmul.mubr.msk.bf16.vlgmr.msra.gmra.mxu0 %vm52_vm0, %v138_v3 }
  0xca   :  { %v133_v5 = vpop.f32.mrf.mxu0 }
  0xcb   :  { %v102_v6 = vadd.f32 %v133_v5, %v116_v4 }
  0xcc   :  { %v93_v7 = vpop.f32.mrf.mxu0 }
  0xcd   :  { %110 = vst [vmem:[%s189_s3 + $0x10] sm:$0xff] %v102_v6  ;;  %v94_v8 = vadd.f32 %v116_v4, %v93_v7 }
  0xce   :  { %v134_v9 = vpop.f32.mrf.mxu0 }
  0xcf   :  { %108 = vst [vmem:[%s189_s3] sm:$0xff] %v94_v8  ;;  %v105_v10 = vadd.f32 %v134_v9, %v116_v4 }
  0xd0   :  { %v96_v11 = vpop.f32.mrf.mxu0 }
  0xd1   :  { %111 = vst [vmem:[%s189_s3 + $0x18] sm:$0xff] %v105_v10  ;;  %v97_v12 = vadd.f32 %v116_v4, %v96_v11 }
  0xd3   :  { %109 = vst [vmem:[%s189_s3 + $0x8] sm:$0xff] %v97_v12 }

</bundles_post_ra>
